<compile_context>
chip_gen: v7x
topology: tpu7x:2x2x1
jax: 0.10.0
libtpu: 0.0.40
codegen_flags: <defaults>
</compile_context>

<pallas_src>
import math

import jax
import jax.numpy as jnp
from jax import lax
from jax.experimental import pallas as pl
from jax.experimental.pallas import tpu as pltpu


def _pred_kernel(scal_ref, w_ref, b_ref, img_ref, pred_ref):
    """Encode + synthetic velocity model + pred = x*alpha - v*sigma.

    scal_ref : SMEM (B, 3)               rows = (alpha, sigma, t)
    w_ref    : SMEM (C, C)               1x1 channel-mix weights
    b_ref    : SMEM (C,)                 channel bias (time-modulated)
    img_ref  : VMEM (1, C, ROWS_T, 128)  image tile, values in [0, 1]
    pred_ref : VMEM (1, C, ROWS_T, 128)  output tile
    """
    bidx = pl.program_id(0)
    alpha = scal_ref[bidx, 0]
    sigma = scal_ref[bidx, 1]
    tval = scal_ref[bidx, 2]

    C = img_ref.shape[1]

    # diffusion_space.encode on dense (ROWS_T, 128) slabs (full vreg density).
    xs = [img_ref[0, c] * 2.0 - 1.0 for c in range(C)]

    # Synthetic velocity model: unrolled 1x1 channel mix as VPU FMAs with SMEM
    # scalar weights (C is tiny -> keep the MXU out), tanh on the EUP.
    for c in range(C):
        acc = w_ref[c, 0] * xs[0]
        for k in range(1, C):
            acc = acc + w_ref[c, k] * xs[k]
        v_c = jnp.tanh(acc + b_ref[c] * tval)
        # pred = x*alpha - v*sigma   (== x*a - (eps - x*s)*s/a exactly)
        pred_ref[0, c] = xs[c] * alpha - v_c * sigma   # direct per-channel store


def _plan_tiles(hw, c, max_tile_bytes=2 * 1024 * 1024):
    """Pick padded row count and rows-per-tile for a (B, C, ROWS, 128) layout.

    ROWS is 128-lane rows, padded to a multiple of 8 (sublane alignment).
    ROWS_TILE is a multiple of 8 that divides ROWS and keeps one f32 block of
    shape (1, C, ROWS_TILE, 128) under `max_tile_bytes`, so double-buffered
    input + output stays well inside v7x's 64 MiB VMEM while tiles remain
    MiB-scale (per-grid-step overhead amortized).
    """
    rows = -(-hw // 128)                 # ceil(hw / 128)
    rows = -(-rows // 8) * 8             # sublane-align
    max_rows = max(8, (max_tile_bytes // (c * 128 * 4)) // 8 * 8)
    if rows <= max_rows:
        return rows, rows
    best = 8
    for tr in range(8, max_rows + 1, 8):
        if rows % tr == 0:
            best = tr
    if best < 128:
        # Awkward row count: pad further so we still get fat tiles.
        rows = -(-rows // max_rows) * max_rows
        best = max_rows
    return rows, best


def _vmem_limit_bytes():
    """v7x has 64 MiB VMEM/TC (keep scoped limit <= ~48 MiB); v5e/v6e 128 MiB."""
    cap = None
    try:
        cap = int(pltpu.get_tpu_info().vmem_capacity_bytes)
    except Exception:
        cap = None
    if not cap or cap < 32 * 1024 * 1024:
        cap = 64 * 1024 * 1024
    return int(min(cap * 3 // 4, 96 * 1024 * 1024))


def denoise_forward(images, t, w_mix, b_mix, threshold_quantile=0.95):
    """JAX wrapper reproducing Model.forward(images, t) (unconditioned path)."""
    B, C, H, W = images.shape
    HW = H * W

    t = jnp.asarray(t, dtype=jnp.float32)
    if t.ndim == 0:
        t = jnp.full((B,), t, dtype=jnp.float32)

    alphas = jnp.cos(t * (jnp.pi / 2.0))
    sigmas = jnp.sin(t * (jnp.pi / 2.0))
    scal = jnp.stack([alphas, sigmas, t], axis=1).astype(jnp.float32)  # (B, 3)

    rows, rows_tile = _plan_tiles(HW, C)
    hw_pad = rows * 128

    img_flat = images.reshape(B, C, HW).astype(jnp.float32)
    if hw_pad != HW:
        img_flat = jnp.pad(img_flat, ((0, 0), (0, 0), (0, hw_pad - HW)),
                           constant_values=0.5)   # encode(0.5) == 0 (ignored anyway)
    img4 = img_flat.reshape(B, C, rows, 128)

    grid = (B, rows // rows_tile)
    smem = pl.BlockSpec(memory_space=pltpu.MemorySpace.SMEM)

    pred4 = pl.pallas_call(
        _pred_kernel,
        out_shape=jax.ShapeDtypeStruct((B, C, rows, 128), jnp.float32),
        grid=grid,
        in_specs=[
            smem,                                                    # (alpha,sigma,t)
            smem,                                                    # channel-mix W
            smem,                                                    # channel bias
            pl.BlockSpec((1, C, rows_tile, 128), lambda b, j: (b, 0, j, 0)),
        ],
        out_specs=pl.BlockSpec((1, C, rows_tile, 128), lambda b, j: (b, 0, j, 0)),
        compiler_params=pltpu.CompilerParams(
            dimension_semantics=("parallel", "parallel"),
            vmem_limit_bytes=_vmem_limit_bytes(),
        ),
    )(scal, w_mix.astype(jnp.float32), b_mix.astype(jnp.float32), img4)

    # Drop padded elements before the quantile / clamp / decode.
    pred = pred4.reshape(B, C, hw_pad)[:, :, :HW]

    # --- dynamic threshold: exact torch.quantile (linear interp) via top-k,
    # with an exact count-based short-circuit so the sort only runs when the
    # 95th percentile can exceed 1.0 (thr is clamped to min 1.0 anyway). ---
    N = C * HW
    h = threshold_quantile * (N - 1)
    lo = int(math.floor(h))
    frac = h - lo
    k = N - lo                                     # covers sorted ranks lo..N-1

    absv = jnp.abs(pred.reshape(B, -1) * 2.0 - 1.0)
    # If at most (k-2) elements are > 1, then sorted_asc[lo+1] <= 1, hence the
    # interpolated quantile <= 1 and thr == 1.0 exactly (no top_k needed).
    count_gt1 = jnp.sum((absv > 1.0).astype(jnp.int32), axis=1)
    can_skip = jnp.all(count_gt1 <= jnp.int32(max(k - 2, 0)))

    def _full_quantile(a):
        topk = jax.lax.top_k(a, k)[0]              # (B, k), descending
        v_lo = topk[:, k - 1]                      # sorted_asc[lo]
        v_hi = topk[:, max(k - 2, 0)]              # sorted_asc[lo + 1]
        qv = v_lo + frac * (v_hi - v_lo)
        return jnp.maximum(qv, 1.0)

    thr = lax.cond(can_skip,
                   lambda a: jnp.ones((B,), jnp.float32),
                   _full_quantile,
                   absv)

    # clamp (forward value of the detach trick) + decode: trivially fusible
    # elementwise work, left to XLA (single HBM pass, no Pallas step overhead).
    thr_b = thr[:, None, None]
    out = (jnp.clip(pred, -thr_b, thr_b) + 1.0) * 0.5
    return out.reshape(B, C, H, W)


if __name__ == "__main__":
    B, C, H, W = 2, 4, 16, 16

    key = jax.random.PRNGKey(0)
    k_img, k_w, k_b, k_t = jax.random.split(key, 4)

    # Inputs: images in [0, 1] (NCHW), timestep t in (0, 1).
    images = jax.random.uniform(k_img, (B, C, H, W), dtype=jnp.float32)
    t = jax.random.uniform(k_t, (B,), dtype=jnp.float32, minval=0.1, maxval=0.9)

    # Deterministic synthetic velocity-model parameters (stand-in for UNet).
    w_mix = 0.2 * jax.random.normal(k_w, (C, C), dtype=jnp.float32)
    b_mix = 0.1 * jax.random.normal(k_b, (C,), dtype=jnp.float32)

    out = denoise_forward(images, t, w_mix, b_mix)
    out = jax.block_until_ready(out)

    # Pure-JAX reference (follows the PyTorch formulas literally).
    x = images.reshape(B, C, H * W) * 2.0 - 1.0
    a = jnp.cos(t * jnp.pi / 2.0)[:, None, None]
    s = jnp.sin(t * jnp.pi / 2.0)[:, None, None]
    v = jnp.tanh(jnp.einsum("ck,bkn->bcn", w_mix, x)
                 + b_mix[None, :, None] * t[:, None, None])
    eps = x * s + v * a
    pred_r = x * a - (eps - x * s) * s / a
    thr_r = jnp.maximum(
        jnp.quantile(jnp.abs(pred_r.reshape(B, -1) * 2.0 - 1.0), 0.95, axis=1),
        1.0)[:, None, None]
    out_r = ((jnp.clip(pred_r, -thr_r, thr_r) + 1.0) * 0.5).reshape(B, C, H, W)

    assert out.shape == (B, C, H, W)
    assert out.dtype == jnp.float32
    assert bool(jnp.all(jnp.isfinite(out)))
    assert bool(jnp.allclose(out, out_r, atol=1e-4, rtol=1e-4))
    print("KERNEL_OK")
</pallas_src>

<mosaic_0001>
module attributes {stable_mosaic.version = 11 : i64} {
  func.func @_pred_kernel(%arg0: i32, %arg1: i32, %arg2: memref<2x3xf32, #tpu.memory_space<smem>>, %arg3: memref<4x4xf32, #tpu.memory_space<smem>>, %arg4: memref<4xf32, #tpu.memory_space<smem>>, %arg5: memref<1x4x8x128xf32, #tpu.memory_space<vmem>>, %arg6: memref<1x4x8x128xf32, #tpu.memory_space<vmem>>) attributes {dimension_semantics = [#tpu.dimension_semantics<parallel>, #tpu.dimension_semantics<parallel>], iteration_bounds = array<i64: 2, 1>, scalar_prefetch = 0 : i64, scratch_operands = 0 : i64, tpu.core_type = #tpu.core_type<tc>, window_params = [{transform_indices = @transform_0, window_bounds = array<i64: 2, 3>}, {transform_indices = @transform_1, window_bounds = array<i64: 4, 4>}, {transform_indices = @transform_2, window_bounds = array<i64: 4>}, {transform_indices = @transform_3, window_bounds = array<i64: 1, 4, 8, 128>}, {transform_indices = @transform_4, window_bounds = array<i64: 1, 4, 8, 128>}]} {
    %0 = arith.index_cast %arg0 : i32 to index
    %c0 = arith.constant 0 : index
    %1 = memref.load %arg2[%0, %c0] : memref<2x3xf32, #tpu.memory_space<smem>>
    %2 = arith.index_cast %arg0 : i32 to index
    %c1 = arith.constant 1 : index
    %3 = memref.load %arg2[%2, %c1] : memref<2x3xf32, #tpu.memory_space<smem>>
    %4 = arith.index_cast %arg0 : i32 to index
    %c2 = arith.constant 2 : index
    %5 = memref.load %arg2[%4, %c2] : memref<2x3xf32, #tpu.memory_space<smem>>
    %c0_0 = arith.constant 0 : index
    %c0_1 = arith.constant 0 : index
    %c0_2 = arith.constant 0 : index
    %c0_3 = arith.constant 0 : index
    %6 = vector.load %arg5[%c0_0, %c0_1, %c0_2, %c0_3] : memref<1x4x8x128xf32, #tpu.memory_space<vmem>>, vector<1x1x8x128xf32>
    %7 = vector.shape_cast %6 : vector<1x1x8x128xf32> to vector<8x128xf32>
    %cst = arith.constant 2.000000e+00 : f32
    %8 = vector.broadcast %cst : f32 to vector<8x128xf32>
    %9 = arith.mulf %7, %8 : vector<8x128xf32>
    %cst_4 = arith.constant 1.000000e+00 : f32
    %10 = vector.broadcast %cst_4 : f32 to vector<8x128xf32>
    %11 = arith.subf %9, %10 : vector<8x128xf32>
    %c0_5 = arith.constant 0 : index
    %c1_6 = arith.constant 1 : index
    %c0_7 = arith.constant 0 : index
    %c0_8 = arith.constant 0 : index
    %12 = vector.load %arg5[%c0_5, %c1_6, %c0_7, %c0_8] : memref<1x4x8x128xf32, #tpu.memory_space<vmem>>, vector<1x1x8x128xf32>
    %13 = vector.shape_cast %12 : vector<1x1x8x128xf32> to vector<8x128xf32>
    %cst_9 = arith.constant 2.000000e+00 : f32
    %14 = vector.broadcast %cst_9 : f32 to vector<8x128xf32>
    %15 = arith.mulf %13, %14 : vector<8x128xf32>
    %cst_10 = arith.constant 1.000000e+00 : f32
    %16 = vector.broadcast %cst_10 : f32 to vector<8x128xf32>
    %17 = arith.subf %15, %16 : vector<8x128xf32>
    %c0_11 = arith.constant 0 : index
    %c2_12 = arith.constant 2 : index
    %c0_13 = arith.constant 0 : index
    %c0_14 = arith.constant 0 : index
    %18 = vector.load %arg5[%c0_11, %c2_12, %c0_13, %c0_14] : memref<1x4x8x128xf32, #tpu.memory_space<vmem>>, vector<1x1x8x128xf32>
    %19 = vector.shape_cast %18 : vector<1x1x8x128xf32> to vector<8x128xf32>
    %cst_15 = arith.constant 2.000000e+00 : f32
    %20 = vector.broadcast %cst_15 : f32 to vector<8x128xf32>
    %21 = arith.mulf %19, %20 : vector<8x128xf32>
    %cst_16 = arith.constant 1.000000e+00 : f32
    %22 = vector.broadcast %cst_16 : f32 to vector<8x128xf32>
    %23 = arith.subf %21, %22 : vector<8x128xf32>
    %c0_17 = arith.constant 0 : index
    %c3 = arith.constant 3 : index
    %c0_18 = arith.constant 0 : index
    %c0_19 = arith.constant 0 : index
    %24 = vector.load %arg5[%c0_17, %c3, %c0_18, %c0_19] : memref<1x4x8x128xf32, #tpu.memory_space<vmem>>, vector<1x1x8x128xf32>
    %25 = vector.shape_cast %24 : vector<1x1x8x128xf32> to vector<8x128xf32>
    %cst_20 = arith.constant 2.000000e+00 : f32
    %26 = vector.broadcast %cst_20 : f32 to vector<8x128xf32>
    %27 = arith.mulf %25, %26 : vector<8x128xf32>
    %cst_21 = arith.constant 1.000000e+00 : f32
    %28 = vector.broadcast %cst_21 : f32 to vector<8x128xf32>
    %29 = arith.subf %27, %28 : vector<8x128xf32>
    %c0_22 = arith.constant 0 : index
    %c0_23 = arith.constant 0 : index
    %30 = memref.load %arg3[%c0_22, %c0_23] : memref<4x4xf32, #tpu.memory_space<smem>>
    %31 = vector.broadcast %30 : f32 to vector<8x128xf32>
    %32 = arith.mulf %31, %11 : vector<8x128xf32>
    %c0_24 = arith.constant 0 : index
    %c1_25 = arith.constant 1 : index
    %33 = memref.load %arg3[%c0_24, %c1_25] : memref<4x4xf32, #tpu.memory_space<smem>>
    %34 = vector.broadcast %33 : f32 to vector<8x128xf32>
    %35 = arith.mulf %34, %17 : vector<8x128xf32>
    %36 = arith.addf %32, %35 : vector<8x128xf32>
    %c0_26 = arith.constant 0 : index
    %c2_27 = arith.constant 2 : index
    %37 = memref.load %arg3[%c0_26, %c2_27] : memref<4x4xf32, #tpu.memory_space<smem>>
    %38 = vector.broadcast %37 : f32 to vector<8x128xf32>
    %39 = arith.mulf %38, %23 : vector<8x128xf32>
    %40 = arith.addf %36, %39 : vector<8x128xf32>
    %c0_28 = arith.constant 0 : index
    %c3_29 = arith.constant 3 : index
    %41 = memref.load %arg3[%c0_28, %c3_29] : memref<4x4xf32, #tpu.memory_space<smem>>
    %42 = vector.broadcast %41 : f32 to vector<8x128xf32>
    %43 = arith.mulf %42, %29 : vector<8x128xf32>
    %44 = arith.addf %40, %43 : vector<8x128xf32>
    %c0_30 = arith.constant 0 : index
    %45 = memref.load %arg4[%c0_30] : memref<4xf32, #tpu.memory_space<smem>>
    %46 = arith.mulf %45, %5 : f32
    %47 = vector.broadcast %46 : f32 to vector<8x128xf32>
    %48 = arith.addf %44, %47 : vector<8x128xf32>
    %49 = math.tanh %48 : vector<8x128xf32>
    %50 = vector.broadcast %1 : f32 to vector<8x128xf32>
    %51 = arith.mulf %11, %50 : vector<8x128xf32>
    %52 = vector.broadcast %3 : f32 to vector<8x128xf32>
    %53 = arith.mulf %49, %52 : vector<8x128xf32>
    %54 = arith.subf %51, %53 : vector<8x128xf32>
    %c0_31 = arith.constant 0 : index
    %c0_32 = arith.constant 0 : index
    %c0_33 = arith.constant 0 : index
    %c0_34 = arith.constant 0 : index
    %55 = vector.load %arg6[%c0_31, %c0_32, %c0_33, %c0_34] : memref<1x4x8x128xf32, #tpu.memory_space<vmem>>, vector<1x1x8x128xf32>
    %56 = vector.shape_cast %55 : vector<1x1x8x128xf32> to vector<8x128xf32>
    %57 = vector.shape_cast %54 : vector<8x128xf32> to vector<1x1x8x128xf32>
    tpu.vector_store %arg6[%c0_31, %c0_32, %c0_33, %c0_34], %57 {strides = array<i32>} : memref<1x4x8x128xf32, #tpu.memory_space<vmem>>, vector<1x1x8x128xf32>,
    %c1_35 = arith.constant 1 : index
    %c0_36 = arith.constant 0 : index
    %58 = memref.load %arg3[%c1_35, %c0_36] : memref<4x4xf32, #tpu.memory_space<smem>>
    %59 = vector.broadcast %58 : f32 to vector<8x128xf32>
    %60 = arith.mulf %59, %11 : vector<8x128xf32>
    %c1_37 = arith.constant 1 : index
    %c1_38 = arith.constant 1 : index
    %61 = memref.load %arg3[%c1_37, %c1_38] : memref<4x4xf32, #tpu.memory_space<smem>>
    %62 = vector.broadcast %61 : f32 to vector<8x128xf32>
    %63 = arith.mulf %62, %17 : vector<8x128xf32>
    %64 = arith.addf %60, %63 : vector<8x128xf32>
    %c1_39 = arith.constant 1 : index
    %c2_40 = arith.constant 2 : index
    %65 = memref.load %arg3[%c1_39, %c2_40] : memref<4x4xf32, #tpu.memory_space<smem>>
    %66 = vector.broadcast %65 : f32 to vector<8x128xf32>
    %67 = arith.mulf %66, %23 : vector<8x128xf32>
    %68 = arith.addf %64, %67 : vector<8x128xf32>
    %c1_41 = arith.constant 1 : index
    %c3_42 = arith.constant 3 : index
    %69 = memref.load %arg3[%c1_41, %c3_42] : memref<4x4xf32, #tpu.memory_space<smem>>
    %70 = vector.broadcast %69 : f32 to vector<8x128xf32>
    %71 = arith.mulf %70, %29 : vector<8x128xf32>
    %72 = arith.addf %68, %71 : vector<8x128xf32>
    %c1_43 = arith.constant 1 : index
    %73 = memref.load %arg4[%c1_43] : memref<4xf32, #tpu.memory_space<smem>>
    %74 = arith.mulf %73, %5 : f32
    %75 = vector.broadcast %74 : f32 to vector<8x128xf32>
    %76 = arith.addf %72, %75 : vector<8x128xf32>
    %77 = math.tanh %76 : vector<8x128xf32>
    %78 = vector.broadcast %1 : f32 to vector<8x128xf32>
    %79 = arith.mulf %17, %78 : vector<8x128xf32>
    %80 = vector.broadcast %3 : f32 to vector<8x128xf32>
    %81 = arith.mulf %77, %80 : vector<8x128xf32>
    %82 = arith.subf %79, %81 : vector<8x128xf32>
    %c0_44 = arith.constant 0 : index
    %c1_45 = arith.constant 1 : index
    %c0_46 = arith.constant 0 : index
    %c0_47 = arith.constant 0 : index
    %83 = vector.load %arg6[%c0_44, %c1_45, %c0_46, %c0_47] : memref<1x4x8x128xf32, #tpu.memory_space<vmem>>, vector<1x1x8x128xf32>
    %84 = vector.shape_cast %83 : vector<1x1x8x128xf32> to vector<8x128xf32>
    %85 = vector.shape_cast %82 : vector<8x128xf32> to vector<1x1x8x128xf32>
    tpu.vector_store %arg6[%c0_44, %c1_45, %c0_46, %c0_47], %85 {strides = array<i32>} : memref<1x4x8x128xf32, #tpu.memory_space<vmem>>, vector<1x1x8x128xf32>,
    %c2_48 = arith.constant 2 : index
    %c0_49 = arith.constant 0 : index
    %86 = memref.load %arg3[%c2_48, %c0_49] : memref<4x4xf32, #tpu.memory_space<smem>>
    %87 = vector.broadcast %86 : f32 to vector<8x128xf32>
    %88 = arith.mulf %87, %11 : vector<8x128xf32>
    %c2_50 = arith.constant 2 : index
    %c1_51 = arith.constant 1 : index
    %89 = memref.load %arg3[%c2_50, %c1_51] : memref<4x4xf32, #tpu.memory_space<smem>>
    %90 = vector.broadcast %89 : f32 to vector<8x128xf32>
    %91 = arith.mulf %90, %17 : vector<8x128xf32>
    %92 = arith.addf %88, %91 : vector<8x128xf32>
    %c2_52 = arith.constant 2 : index
    %c2_53 = arith.constant 2 : index
    %93 = memref.load %arg3[%c2_52, %c2_53] : memref<4x4xf32, #tpu.memory_space<smem>>
    %94 = vector.broadcast %93 : f32 to vector<8x128xf32>
    %95 = arith.mulf %94, %23 : vector<8x128xf32>
    %96 = arith.addf %92, %95 : vector<8x128xf32>
    %c2_54 = arith.constant 2 : index
    %c3_55 = arith.constant 3 : index
    %97 = memref.load %arg3[%c2_54, %c3_55] : memref<4x4xf32, #tpu.memory_space<smem>>
    %98 = vector.broadcast %97 : f32 to vector<8x128xf32>
    %99 = arith.mulf %98, %29 : vector<8x128xf32>
    %100 = arith.addf %96, %99 : vector<8x128xf32>
    %c2_56 = arith.constant 2 : index
    %101 = memref.load %arg4[%c2_56] : memref<4xf32, #tpu.memory_space<smem>>
    %102 = arith.mulf %101, %5 : f32
    %103 = vector.broadcast %102 : f32 to vector<8x128xf32>
    %104 = arith.addf %100, %103 : vector<8x128xf32>
    %105 = math.tanh %104 : vector<8x128xf32>
    %106 = vector.broadcast %1 : f32 to vector<8x128xf32>
    %107 = arith.mulf %23, %106 : vector<8x128xf32>
    %108 = vector.broadcast %3 : f32 to vector<8x128xf32>
    %109 = arith.mulf %105, %108 : vector<8x128xf32>
    %110 = arith.subf %107, %109 : vector<8x128xf32>
    %c0_57 = arith.constant 0 : index
    %c2_58 = arith.constant 2 : index
    %c0_59 = arith.constant 0 : index
    %c0_60 = arith.constant 0 : index
    %111 = vector.load %arg6[%c0_57, %c2_58, %c0_59, %c0_60] : memref<1x4x8x128xf32, #tpu.memory_space<vmem>>, vector<1x1x8x128xf32>
    %112 = vector.shape_cast %111 : vector<1x1x8x128xf32> to vector<8x128xf32>
    %113 = vector.shape_cast %110 : vector<8x128xf32> to vector<1x1x8x128xf32>
    tpu.vector_store %arg6[%c0_57, %c2_58, %c0_59, %c0_60], %113 {strides = array<i32>} : memref<1x4x8x128xf32, #tpu.memory_space<vmem>>, vector<1x1x8x128xf32>,
    %c3_61 = arith.constant 3 : index
    %c0_62 = arith.constant 0 : index
    %114 = memref.load %arg3[%c3_61, %c0_62] : memref<4x4xf32, #tpu.memory_space<smem>>
    %115 = vector.broadcast %114 : f32 to vector<8x128xf32>
    %116 = arith.mulf %115, %11 : vector<8x128xf32>
    %c3_63 = arith.constant 3 : index
    %c1_64 = arith.constant 1 : index
    %117 = memref.load %arg3[%c3_63, %c1_64] : memref<4x4xf32, #tpu.memory_space<smem>>
    %118 = vector.broadcast %117 : f32 to vector<8x128xf32>
    %119 = arith.mulf %118, %17 : vector<8x128xf32>
    %120 = arith.addf %116, %119 : vector<8x128xf32>
    %c3_65 = arith.constant 3 : index
    %c2_66 = arith.constant 2 : index
    %121 = memref.load %arg3[%c3_65, %c2_66] : memref<4x4xf32, #tpu.memory_space<smem>>
    %122 = vector.broadcast %121 : f32 to vector<8x128xf32>
    %123 = arith.mulf %122, %23 : vector<8x128xf32>
    %124 = arith.addf %120, %123 : vector<8x128xf32>
    %c3_67 = arith.constant 3 : index
    %c3_68 = arith.constant 3 : index
    %125 = memref.load %arg3[%c3_67, %c3_68] : memref<4x4xf32, #tpu.memory_space<smem>>
    %126 = vector.broadcast %125 : f32 to vector<8x128xf32>
    %127 = arith.mulf %126, %29 : vector<8x128xf32>
    %128 = arith.addf %124, %127 : vector<8x128xf32>
    %c3_69 = arith.constant 3 : index
    %129 = memref.load %arg4[%c3_69] : memref<4xf32, #tpu.memory_space<smem>>
    %130 = arith.mulf %129, %5 : f32
    %131 = vector.broadcast %130 : f32 to vector<8x128xf32>
    %132 = arith.addf %128, %131 : vector<8x128xf32>
    %133 = math.tanh %132 : vector<8x128xf32>
    %134 = vector.broadcast %1 : f32 to vector<8x128xf32>
    %135 = arith.mulf %29, %134 : vector<8x128xf32>
    %136 = vector.broadcast %3 : f32 to vector<8x128xf32>
    %137 = arith.mulf %133, %136 : vector<8x128xf32>
    %138 = arith.subf %135, %137 : vector<8x128xf32>
    %c0_70 = arith.constant 0 : index
    %c3_71 = arith.constant 3 : index
    %c0_72 = arith.constant 0 : index
    %c0_73 = arith.constant 0 : index
    %139 = vector.load %arg6[%c0_70, %c3_71, %c0_72, %c0_73] : memref<1x4x8x128xf32, #tpu.memory_space<vmem>>, vector<1x1x8x128xf32>
    %140 = vector.shape_cast %139 : vector<1x1x8x128xf32> to vector<8x128xf32>
    %141 = vector.shape_cast %138 : vector<8x128xf32> to vector<1x1x8x128xf32>
    tpu.vector_store %arg6[%c0_70, %c3_71, %c0_72, %c0_73], %141 {strides = array<i32>} : memref<1x4x8x128xf32, #tpu.memory_space<vmem>>, vector<1x1x8x128xf32>,
    return
  }
  func.func @transform_0(%arg0: i32, %arg1: i32) -> (i32, i32) {
    %c0_i32 = arith.constant 0 : i32
    %c0_i32_0 = arith.constant 0 : i32
    %c0_i32_1 = arith.constant 0 : i32
    return %c0_i32, %c0_i32_0 : i32, i32
  }
  func.func @transform_1(%arg0: i32, %arg1: i32) -> (i32, i32) {
    %c0_i32 = arith.constant 0 : i32
    %c0_i32_0 = arith.constant 0 : i32
    %c0_i32_1 = arith.constant 0 : i32
    return %c0_i32, %c0_i32_0 : i32, i32
  }
  func.func @transform_2(%arg0: i32, %arg1: i32) -> i32 {
    %c0_i32 = arith.constant 0 : i32
    %c0_i32_0 = arith.constant 0 : i32
    return %c0_i32 : i32
  }
  func.func @transform_3(%arg0: i32, %arg1: i32) -> (i32, i32, i32, i32) {
    %c0_i32 = arith.constant 0 : i32
    %c0_i32_0 = arith.constant 0 : i32
    %c0_i32_1 = arith.constant 0 : i32
    return %arg0, %c0_i32, %arg1, %c0_i32_0 : i32, i32, i32, i32
  }
  func.func @transform_4(%arg0: i32, %arg1: i32) -> (i32, i32, i32, i32) {
    %c0_i32 = arith.constant 0 : i32
    %c0_i32_0 = arith.constant 0 : i32
    %c0_i32_1 = arith.constant 0 : i32
    return %arg0, %c0_i32, %arg1, %c0_i32_0 : i32, i32, i32, i32
  }
}

</mosaic_0001>

<bundles_post_ra>
// kernel: tpu_custom_call.1
= control target key start
LH: loop header
LB: loop body
LE: loop exit
PB: predicated region body
PF: predicated region fallthrough
CT: control target
= control target key end

     0   :  { %s1235_s0 = inlined_call_operand.hbm [shape: f32[2,3], index: 0, kind: input, shape index: {}]   ;;  %s1236_s1 = inlined_call_operand.hbm [shape: f32[4,4], index: 1, kind: input, shape index: {}]   ;;  %s1237_s2 = inlined_call_operand.vmem [shape: f32[4], index: 2, kind: input, shape index: {}]   ;;  %s1238_s3 = inlined_call_operand.hbm [shape: f32[2,4,8,128], index: 3, kind: input, shape index: {}]   ;;  %s1239_s4 = inlined_call_operand.hbm [shape: f32[2,4,8,128], index: 4, kind: output, shape index: {}]  }
   0x1   :  { %1245 = sst [smem:[#allocation17_spill]] %s1235_s0 }
   0x2   :  { %1246 = sst [smem:[#allocation18_spill]] %s1236_s1 }
   0x3   :  { %1247 = sst [smem:[#allocation19_spill]] %s1237_s2 }
   0x4   :  { %9 = vsyncpa [#allocation5], 0 }
   0x5   :  { %10 = vsyncpa [#allocation8], 0 }
   0x6   :  { %11 = vsyncpa [#allocation6], 0 }
   0x7   :  { %12 = vsyncpa [#allocation3], 0 }
   0x8   :  { %14 = vsyncpa [#allocation3 + $0x1], 0 }
   0x9   :  { %15 = vsyncpa [#allocation4], 0 }
   0xa   :  { %17 = vsyncpa [#allocation4 + $0x1], 0  ;;  %s883_s15 = smov 0   ;;  %s885_s16 = smov 0  }
   0xb   :  { %s887_s17 = smov 0   ;;  %s889_s18 = smov 0  }
   0xc   :  { %s891_s19 = smov 0   ;;  %s893_s20 = smov 0  }
   0xd LB: > { %s525_s21 = sadd.s32 4294967295, %s847_s20   ;;  %s526_s22 = sadd.s32 4294967294, %s847_s20   ;;  %s847_s20 = sphi %s893_s20, %s23_s20   ;;  %s843_s19 = sphi %s891_s19, %s1270_s19   ;;  %s839_s18 = sphi %s889_s18, %s1269_s18   ;;  %s835_s17 = sphi %s887_s17, %s1268_s17   ;;  %s831_s16 = sphi %s885_s16, %s1267_s16   ;;  %s827_s15 = sphi %s883_s15, %s1266_s15  }
   0xe   : > { %p120_p0 = scmp.ne.s32.totalorder %s831_s16, %s827_s15  ;;  %p917_p1 = scmp.eq.s32.totalorder %s525_s21, 0 }
   0xf   : > { %p921_p2 = scmp.eq.s32.totalorder %s525_s21, 1  ;;  %p152_p3 = scmp.eq.s32.totalorder %s526_s22, 1 }
  0x10   : > { %s1248_s23 = scalar_select %p917_p1, 1, 0 }
  0x11   : > { %p927_p4 = por %p917_p1, %p120_p0  ;;  %p527_p5 = scmp.ge.s32.totalorder %s847_s20, 1 }
  0x12   : > { %p932_p6 = por %p152_p3, %p120_p0  ;;  %p159_p7 = scmp.lt.s32.totalorder %s847_s20, 3 }
  0x13   : > { %s1250_s25 = scalar_select %p927_p4, 1, 0 }
  0x14   : > { %s1251_s26 = scalar_select %p932_p6, 1, 0 }
  0x15   : > { %p937_p8 = pnand %p527_p5, %p159_p7  ;;  %s1253_s2 = sld [smem:[#allocation19_spill]] }
  0x16   : > { %s35_s6 = sadd.s32 1, %s843_s19  ;;  %s1255_s0 = sld [smem:[#allocation17_spill]] }
  0x17   : > { %p593_p10 = pneg %p937_p8 }
  0x19   : > { %p951_p11 = pnand %p593_p10, %p917_p1 }
  0x1b   : > { %s190_s30 = sshll.u32 %s1253_s2, 4  ;;  %p684_p13 = pneg %p951_p11  ;;  %s947_s30 = int_to_ptr.vmem [resolvable:$true] %s190_s30 }
  0x1c   : > { %s682_s9 = scalar_lea.hbm %s1255_s0, 32 }
  0x1d   : > { %p683_p12 = scmp.ne.s32.totalorder %s1255_s0, %s682_s9  ;;  %p689_p5 = scmp.lt.u32.totalorder %s682_s9, %s1255_s0 }
  0x1f   : > { %p685_p0 = pnand %p684_p13, %p683_p12 }
  0x21   : > { %p686_p3 = pneg %p685_p0 }
  0x23   : > { %p691_p7 = pnand %p689_p5, %p686_p3 }
  0x25   : > { %694 = shalt.err (!%p691_p7)
}
  0x26   : > { %s849_s14 = smov [#allocation2]   ;;  %s1256_s1 = sld [smem:[#allocation18_spill]] }
  0x27   : > { %596 = dma.hbm_to_smem (!%p951_p11), %s1255_s0, 32, %s849_s14, [#allocation5]  }
  0x2c   : > { %s695_s7 = scalar_lea.hbm %s1256_s1, 64 }
  0x2d   : > { %p696_p10 = scmp.ne.s32.totalorder %s1256_s1, %s695_s7  ;;  %p702_p3 = scmp.lt.u32.totalorder %s695_s7, %s1256_s1 }
  0x2f   : > { %p698_p12 = pnand %p696_p10, %p684_p13 }
  0x31   : > { %p699_p0 = pneg %p698_p12 }
  0x33   : > { %p704_p5 = pnand %p702_p3, %p699_p0 }
  0x35   : > { %707 = shalt.err (!%p704_p5)
}
  0x36   : > { %s850_s12 = smov [#allocation7]   ;;  %s708_s21 = scalar_lea.vmem %s947_s30, 16 }
  0x37   : > { %599 = dma.hbm_to_smem (!%p951_p11), %s1256_s1, 64, %s850_s12, [#allocation8]  }
  0x38   : > { %p709_p7 = scmp.ne.s32.totalorder %s947_s30, %s708_s21  ;;  %p716_p0 = scmp.lt.s32.totalorder %s947_s30, %s947_s30 }
  0x39   : > { %p717_p3 = scmp.lt.s32.totalorder %s708_s21, %s708_s21 }
  0x3a   : > { %p711_p10 = pnand %p709_p7, %p684_p13 }
  0x3b   : > { %p718_p5 = por %p717_p3, %p716_p0 }
  0x3c   : > { %p712_p12 = pneg %p711_p10 }
  0x3e   : > { %p719_p9 = pnand %p718_p5, %p712_p12 }
  0x40   : > { %722 = shalt.err (!%p719_p9)
}
  0x41   : > { %s851_s22 = smov [#allocation9]   ;;  %p37_p13 = scmp.ge.s32.totalorder %s35_s6, 2 }
  0x42   : > { %602 = dma.vmem_to_smem (!%p951_p11), %s947_s30, 16, %s851_s22, [#allocation6]  }
  0x43   : > { %s107_s28 = sadd.s32 1, %s835_s17  ;;  %p114_p9 = scmp.ne.s32.totalorder %s835_s17, %s831_s16 }
  0x44   : > { %p115_p7 = scmp.eq.s32.totalorder %s847_s20, 0  ;;  %s1272_s6 = smov (%p37_p13, %s35_s6), 0 }
  0x45   : > { %p1018_p12 = por %p921_p2, %p114_p9  ;;  %s102_s30 = ssub.s32 %s843_s19, %s1272_s6 }
  0x46   : > { %p1012_p10 = por %p115_p7, %p114_p9  ;;  %p614_p11 = scmp.lt.s32.totalorder %s847_s20, 2 }
  0x47   : > { %s1258_s29 = scalar_select %p1018_p12, 1, 0 }
  0x48   : > { %p105_p0 = scmp.eq.s32.totalorder %s102_s30, 0  ;;  %s201_s7 = sand.u32 1, %s835_s17  }
  0x49   : > { %s532_s8 = sshll.u32 %s201_s7, 5  ;;  %s575_s9 = sshll.u32 %s843_s19, 9 }
  0x4a   : > { %s1027_s10 = scalar_select %p105_p0, %s835_s17, %s107_s28  }
  0x4b   : > { %s1033_s13 = scalar_lea.hbm %s1238_s3, %s575_s9  ;;  %s205_s24 = scalar_lea.vmem [#allocation10], %s532_s8 }
  0x4c   : > { %s213_s14 = sshll.u32 %s205_s24, 4  ;;  %p1039_p2 = pnand %p614_p11, %p1012_p10  ;;  %s1035_s14 = int_to_ptr.vmem [resolvable:$true] %s213_s14 }
  0x4d   : > { %s1043_s22 = scalar_lea.sflag [#allocation3], %s201_s7  ;;  %s723_s28 = scalar_lea.hbm %s1033_s13, 512 }
  0x4e   : > { %p724_p3 = scmp.ne.s32.totalorder %s1033_s13, %s723_s28  ;;  %p725_p5 = pneg %p1039_p2 }
  0x4f   : > { %s728_s5 = scalar_lea.hbm %s1238_s3, 1024  ;;  %p729_p7 = scmp.lt.u32.totalorder %s1033_s13, %s1238_s3 }
  0x50   : > { %p726_p13 = pnand %p725_p5, %p724_p3  ;;  %p730_p10 = scmp.lt.u32.totalorder %s728_s5, %s723_s28 }
  0x51   : > { %p732_p0 = scmp.lt.u32.totalorder %s723_s28, %s1033_s13 }
  0x52   : > { %p727_p9 = pneg %p726_p13  ;;  %p731_p11 = por %p730_p10, %p729_p7 }
  0x54   : > { %p733_p6 = por %p732_p0, %p731_p11 }
  0x56   : > { %p734_p12 = pnand %p733_p6, %p727_p9 }
  0x58   : > { %737 = shalt.err (!%p734_p12)
}
  0x59   : > { %s738_s7 = scalar_lea.vmem %s1035_s14, 512  ;;  %s852_s12 = smov [#allocation10]  }
  0x5a   : > { %p739_p3 = scmp.ne.s32.totalorder %s1035_s14, %s738_s7  ;;  %s743_s24 = sshll.u32 %s852_s12, 4  ;;  %s744_s24 = int_to_ptr.vmem [resolvable:$false] %s743_s24 }
  0x5b   : > { %s745_s30 = scalar_lea.vmem %s744_s24, 1024  ;;  %p746_p1 = scmp.lt.s32.totalorder %s1035_s14, %s744_s24 }
  0x5c   : > { %p741_p13 = pnand %p739_p3, %p725_p5  ;;  %p747_p7 = scmp.lt.s32.totalorder %s745_s30, %s738_s7 }
  0x5e   : > { %p742_p4 = pneg %p741_p13  ;;  %p748_p10 = por %p747_p7, %p746_p1 }
  0x60   : > { %p749_p11 = pnand %p748_p10, %p742_p4 }
  0x62   : > { %752 = shalt.err (!%p749_p11)
}
  0x63   : > { %s853_s28 = smov 128   ;;  %s854_s8 = smov 8  }
  0x64   : > { %606 = dma.hbm_to_vmem [thread:$0]  (!%p1039_p2), %s1033_s13, 512, %s1035_s14, %s1043_s22, %s853_s28, %s853_s28, %s854_s8  }
  0x65   : > { %225 = sbr.rel (%p937_p8) target bundleno = 177 (0xb1), region = 36  ;;  %p1260_p6 = scmp.ne.s32.totalorder (!%p937_p8), %s1248_s23, 0 }
  0x6c   : > { %806 = dma.done.wait (%p1260_p6), [#allocation5], 32  }
  0x6d   : > { %808 = vsyncadd (%p1260_p6), [#allocation5], 4294967264 }
  0x6e   : > { %810 = dma.done.wait (%p1260_p6), [#allocation8], 64  }
  0x6f   : > { %812 = vsyncadd (%p1260_p6), [#allocation8], 4294967232 }
  0x70   : > { %814 = dma.done.wait (%p1260_p6), [#allocation6], 16  }
  0x71   : > { %816 = vsyncadd (%p1260_p6), [#allocation6], 4294967280  ;;  %s1086_s27 = sand.u32 1, %s831_s16   ;;  %p1261_p1 = scmp.ne.s32.totalorder %s1250_s25, 0 }
  0x72   : > { %s1244_s13 = sshll.u32 %s1086_s27, 5  ;;  %s240_s14 = scalar_lea.sflag [#allocation3], %s1086_s27 }
  0x73   : > { %s243_s21 = scalar_lea.vmem [#allocation10], %s1244_s13 }
  0x74   : > { %818 = dma.done.wait (%p1261_p1), %s240_s14, 512  }
  0x75   : > { %820 = vsyncadd (%p1261_p1), %s240_s14, 4294966784 }
  0x76   : > { %248 = sfence }
  0x77   : > { %s1097_s23 = sshll.u32 %s839_s18, 7  ;;  %v275_v0 = vld [vmem:[%s243_s21] sm:$0xff]  ;;  %v543_v1 = vld [vmem:[%s243_s21 + $0x8] sm:$0xff]  ;;  %v545_v2 = vld [vmem:[%s243_s21 + $0x10] sm:$0xff]  ;;  %s290_s9 = sld [smem:[#allocation7]] }
  0x78   : > { %s273_s22 = sadd.s32 2, %s1097_s23  ;;  %v276_v3 = vmul.f32 2.0, %v275_v0  ;;  %v547_v4 = vld [vmem:[%s243_s21 + $0x18] sm:$0xff]  ;;  %v280_v5 = vmul.f32 2.0, %v543_v1  ;;  %v284_v6 = vmul.f32 2.0, %v545_v2  ;;  %s549_s11 = sld [smem:[#allocation7 + $0x1]] }
  0x79   : > { %s1100_s5 = sld [smem:[#allocation2 + %s273_s22]]  ;;  %v288_v7 = vmul.f32 2.0, %v547_v4  ;;  %p1263_p8 = scmp.ne.s32.totalorder %s1258_s29, 0 }
  0x7a   : > { %s550_s7 = sld [smem:[#allocation7 + $0x2]]  ;;  %s551_s25 = sld [smem:[#allocation7 + $0x3]]  ;;  %v1104_v8 = vadd.f32 -1.0, %v276_v3  ;;  %v1106_v9 = vadd.f32 -1.0, %v280_v5  ;;  %v1108_v10 = vadd.f32 -1.0, %v284_v6 }
  0x7b   : > { %s1102_s12 = sld [smem:[#allocation9]]  ;;  %s553_s30 = sld [smem:[#allocation7 + $0x81]]  ;;  %v1114_v11 = vadd.f32 -1.0, %v288_v7 }
  0x7c   : > { %s552_s24 = sld [smem:[#allocation7 + $0x80]]  ;;  %s1110_s28 = sld [smem:[#allocation7 + $0x82]] }
  0x7d   : > { %s1112_s8 = sld [smem:[#allocation7 + $0x83]]  ;;  %v291_v12 = vstv %s290_s9  ;;  %s1116_s14 = sld [smem:[#allocation9 + $0x1]] }
  0x7e   : > { %s1118_s21 = sld [smem:[#allocation7 + $0x100]]  ;;  %v292_v13 = vmul.f32 %v1104_v8, %v291_v12  ;;  %v294_v14 = vstv %s549_s11  ;;  %s1121_s22 = sld [smem:[#allocation7 + $0x101]] }
  0x7f   : > { %s1123_s13 = sld [smem:[#allocation7 + $0x102]]  ;;  %v295_v16 = vmul.f32 %v1106_v9, %v294_v14  ;;  %s1129_s0 = sld [smem:[#allocation7 + $0x103]] }
  0x80   : > { %v298_v15 = vstv %s550_s7  ;;  %v302_v18 = vstv %s551_s25  ;;  %s1131_s1 = sld [smem:[#allocation9 + $0x2]]  ;;  %s1133_s2 = sld [smem:[#allocation7 + $0x180]] }
  0x81   : > { %v299_v17 = vmul.f32 %v1108_v10, %v298_v15  ;;  %s306_s9 = smul.f32 %s1102_s12, %s1100_s5  ;;  %v296_v20 = vadd.f32 %v295_v16, %v292_v13  ;;  %v303_v21 = vmul.f32 %v1114_v11, %v302_v18  ;;  %v320_v23 = vstv %s553_s30  ;;  %s1137_s11 = sld [smem:[#allocation7 + $0x181]] }
  0x82   : > { %v317_v19 = vstv %s552_s24  ;;  %s1139_s7 = sld [smem:[#allocation7 + $0x182]]  ;;  %v321_v25 = vmul.f32 %v1106_v9, %v320_v23  ;;  %v324_v26 = vstv %s1110_s28  ;;  %s1144_s25 = sld [smem:[#allocation7 + $0x183]] }
  0x83   : > { %v318_v22 = vmul.f32 %v1104_v8, %v317_v19  ;;  %v307_v24 = vstv %s306_s9  ;;  %v328_v27 = vstv %s1112_s8  ;;  %s1146_s12 = sld [smem:[#allocation9 + $0x3]]  ;;  %v300_v28 = vadd.f32 %v299_v17, %v296_v20  ;;  %s332_s24 = smul.f32 %s1116_s14, %s1100_s5 }
  0x84   : > { %v325_v29 = vmul.f32 %v1108_v10, %v324_v26  ;;  %v329_v30 = vmul.f32 %v1114_v11, %v328_v27  ;;  %v342_v31 = vstv %s1118_s21  ;;  %v345_v34 = vstv %s1121_s22  ;;  %s271_s30 = sadd.s32 1, %s1097_s23  ;;  %s270_s8 = sld [smem:[#allocation2 + %s1097_s23]] }
  0x85   : > { %v322_v32 = vadd.f32 %v321_v25, %v318_v22  ;;  %v343_v33 = vmul.f32 %v1104_v8, %v342_v31  ;;  %v349_v35 = vstv %s1123_s13  ;;  %v304_v36 = vadd.f32 %v303_v21, %v300_v28  ;;  %s272_s13 = sld [smem:[#allocation2 + %s271_s30]]  ;;  %s392_s9 = scalar_lea.sflag [#allocation4], %s1086_s27 }
  0x86   : > { %v346_v37 = vmul.f32 %v1106_v9, %v345_v34  ;;  %v350_v38 = vmul.f32 %v1108_v10, %v349_v35  ;;  %v333_v40 = vstv %s332_s24  ;;  %v353_v41 = vstv %s1129_s0  ;;  %s357_s28 = smul.f32 %s1131_s1, %s1100_s5  ;;  %s1262_s1 = sshll.u32 %s1086_s27, 5 }
  0x87   : > { %v326_v39 = vadd.f32 %v325_v29, %v322_v32  ;;  %v367_v42 = vstv %s1133_s2  ;;  %v308_v43 = vadd.f32 %v307_v24, %v304_v36  ;;  %v354_v45 = vmul.f32 %v1114_v11, %v353_v41  ;;  %s268_s2 = scalar_lea.vmem [#allocation11], %s1262_s1 }
  0x88   : > { %v347_v44 = vadd.f32 %v346_v37, %v343_v33  ;;  %v368_v46 = vmul.f32 %v1104_v8, %v367_v42  ;;  %v370_v48 = vstv %s1137_s11  ;;  %v374_v49 = vstv %s1139_s7  ;;  %s406_s23 = sshll.u32 %s268_s2, 4  ;;  %s1181_s23 = int_to_ptr.vmem [resolvable:$true] %s406_s23 }
  0x89   : > { %v330_v47 = vadd.f32 %v329_v30, %v326_v39  ;;  %674 = vtanh.f32 %v308_v43  ;;  %v371_v51 = vmul.f32 %v1106_v9, %v370_v48  ;;  %v375_v52 = vmul.f32 %v1108_v10, %v374_v49  ;;  %s382_s0 = smul.f32 %s1146_s12, %s1100_s5  ;;  %s576_s5 = sshll.u32 %s839_s18, 9 }
  0x8a   : > { %v351_v50 = vadd.f32 %v350_v38, %v347_v44  ;;  %v358_v54 = vstv %s357_s28  ;;  %v378_v55 = vstv %s1144_s25  ;;  %v310_v62 = vstv %s270_s8  ;;  %s1186_s22 = scalar_lea.hbm %s1239_s4, %s576_s5  ;;  %s753_s11 = scalar_lea.vmem %s1181_s23, 512 }
  0x8b   : > { %v334_v53 = vadd.f32 %v333_v40, %v330_v47  ;;  %v372_v57 = vadd.f32 %v371_v51, %v368_v46  ;;  %v379_v58 = vmul.f32 %v1114_v11, %v378_v55  ;;  %v383_v61 = vstv %s382_s0  ;;  %p754_p4 = scmp.ne.s32.totalorder %s1181_s23, %s753_s11  ;;  %s855_s18 = smov [#allocation11]  }
  0x8c   : > { %v355_v56 = vadd.f32 %v354_v45, %v351_v50  ;;  %v312_v0 = vstv %s272_s13  ;;  %v311_v2 = vmul.f32 %v1104_v8, %v310_v62  ;;  %v336_v5 = vmul.f32 %v1106_v9, %v310_v62  ;;  %s757_s7 = sshll.u32 %s855_s18, 4  ;;  %s758_s7 = int_to_ptr.vmem [resolvable:$false] %s757_s7 }
  0x8d   : > { %676 = vtanh.f32 %v334_v53  ;;  %v376_v60 = vadd.f32 %v375_v52, %v372_v57  ;;  %v361_v13 = vmul.f32 %v1108_v10, %v310_v62  ;;  %v386_v17 = vmul.f32 %v1114_v11, %v310_v62  ;;  %p755_p12 = pnand %p754_p4, %p1263_p8  ;;  %s759_s25 = scalar_lea.vmem %s758_s7, 1024 }
  0x8e   : > { %v359_v59 = vadd.f32 %v358_v54, %v355_v56  ;;  %p760_p5 = scmp.lt.s32.totalorder %s1181_s23, %s758_s7  ;;  %p761_p9 = scmp.lt.s32.totalorder %s759_s25, %s753_s11 }
  0x8f   : > { %v380_v63 = vadd.f32 %v379_v58, %v376_v60  ;;  %p756_p2 = pneg %p755_p12 }
  0x90   : > { %678 = vtanh.f32 %v359_v59  ;;  %p762_p0 = por %p761_p9, %p760_p5 }
  0x91   : > { %v384_v1 = vadd.f32 %v383_v61, %v380_v63 }
  0x92   : > { %p763_p3 = pnand %p762_p0, %p756_p2 }
  0x93   : > { %v675_v3 = vpop.eup %674  ;;  %680 = vtanh.f32 %v384_v1 }
  0x94   : > { %v313_v4 = vmul.f32 %v675_v3, %v312_v0 }
  0x96   : > { %v314_v7 = vsub.f32 %v311_v2, %v313_v4 }
  0x97   : > { %v677_v6 = vpop.eup %676 }
  0x98   : > { %v337_v12 = vmul.f32 %v677_v6, %v312_v0  ;;  %315 = vst [vmem:[%s268_s2] sm:$0xff] %v314_v7 }
  0x9a   : > { %v679_v14 = vpop.eup %678  ;;  %v338_v15 = vsub.f32 %v336_v5, %v337_v12 }
  0x9b   : > { %v362_v16 = vmul.f32 %v679_v14, %v312_v0 }
  0x9c   : > { %557 = vst [vmem:[%s268_s2 + $0x8] sm:$0xff] %v338_v15 }
  0x9d   : > { %v363_v8 = vsub.f32 %v361_v13, %v362_v16  ;;  %v681_v18 = vpop.eup %680 }
  0x9e   : > { %v387_v9 = vmul.f32 %v681_v18, %v312_v0 }
  0x9f   : > { %563 = vst [vmem:[%s268_s2 + $0x10] sm:$0xff] %v363_v8 }
  0xa0   : > { %v388_v10 = vsub.f32 %v386_v17, %v387_v9 }
  0xa2   : > { %569 = vst [vmem:[%s268_s2 + $0x18] sm:$0xff] %v388_v10 }
  0xa3   : > { %766 = shalt.err (!%p763_p3)
}
  0xa4   : > { %s767_s12 = scalar_lea.hbm %s1186_s22, 512  ;;  %s771_s28 = scalar_lea.hbm %s1239_s4, 1024 }
  0xa5   : > { %p768_p13 = scmp.ne.s32.totalorder %s1186_s22, %s767_s12  ;;  %p772_p11 = scmp.lt.u32.totalorder %s1186_s22, %s1239_s4 }
  0xa6   : > { %p773_p6 = scmp.lt.u32.totalorder %s771_s28, %s767_s12  ;;  %p775_p4 = scmp.lt.u32.totalorder %s767_s12, %s1186_s22 }
  0xa7   : > { %p769_p7 = pnand %p768_p13, %p1263_p8 }
  0xa8   : > { %p774_p1 = por %p773_p6, %p772_p11 }
  0xa9   : > { %p770_p10 = pneg %p769_p7 }
  0xaa   : > { %p776_p12 = por %p775_p4, %p774_p1 }
  0xac   : > { %p777_p2 = pnand %p776_p12, %p770_p10 }
  0xae   : > { %780 = shalt.err (!%p777_p2)
}
  0xaf   : > { %s856_s0 = smov 128   ;;  %s857_s1 = smov 8  }
  0xb0   : > { %591 = dma.vmem_to_hbm [thread:$0]  (%p1263_p8), %s1181_s23, 512, %s1186_s22, %s392_s9, %s856_s0, %s856_s0, %s857_s1  }
  0xb1 PF: > { %s421_s2 = sand.u32 1, %s827_s15   ;;  %p1264_p5 = scmp.ne.s32.totalorder %s1251_s26, 0 }
  0xb2   : > { %p1265_p9 = scmp.ge.s32.totalorder %s847_s20, 2  ;;  %s422_s5 = scalar_lea.sflag [#allocation4], %s421_s2 }
  0xb4   : > { %p608_p0 = pnand %p1265_p9, %p1264_p5 }
  0xb6   : > { %822 = dma.done.wait (!%p608_p0), %s422_s5, 512  }
  0xb7   : > { %824 = vsyncadd (!%p608_p0), %s422_s5, 4294966784  ;;  %s23_s20 = sadd.s32 1, %s847_s20   ;;  %s1266_s15 = smov %s831_s16 }
  0xb8   : > { %p20_p3 = scmp.ge.s32.totalorder %s23_s20, 4   ;;  %s1267_s16 = smov %s835_s17 }
  0xb9   : > { %s1268_s17 = smov %s1027_s10  ;;  %s1269_s18 = smov %s843_s19 }
  0xba   : > { %s1270_s19 = smov %s1272_s6  ;;  %22 = sbr.rel (!%p20_p3) target bundleno = 13 (0xd), region = 101 }
  0xc1   :  { %427 = vsyncpa [#allocation3], 1 }
  0xc2   :  { %429 = vsyncpa [#allocation3 + $0x1], 1 }
  0xc3   :  { %430 = vsyncpa [#allocation4], 1 }
  0xc4   :  { %432 = vsyncpa [#allocation4 + $0x1], 1 }
  0xc5   :  { %433 = vsyncpa [#allocation5], 1 }
  0xc6   :  { %435 = vsyncpa [#allocation5 + $0x1], 1 }
  0xc7   :  { %436 = vsyncpa [#allocation8], 1 }
  0xc8   :  { %437 = vsyncpa [#allocation6], 1 }
  0xc9   :  { %439 = vsyncpa [#allocation6 + $0x1], 1 }

</bundles_post_ra>
